<compile_context>
chip_gen: v7x
topology: tpu7x:2x2x1
jax: 0.10.0
libtpu: 0.0.40
codegen_flags: <defaults>
</compile_context>

<pallas_src>
import functools

import jax
import jax.numpy as jnp
from jax.experimental import pallas as pl
from jax.experimental.pallas import tpu as pltpu


def one_hot_net_kernel(sd_ref, x_ref, n_ref, w_ref, b_ref, o_ref):
    # sd_ref: (1,) f32 SMEM scalar.
    # x_ref, n_ref: [F, TM] bf16 (native torch [feature_len, N] layout).
    # w_ref: [F, C_pad] bf16 (VMEM-resident, zero-padded columns).
    # b_ref: [1, C_pad] f32 (zero-padded).
    # o_ref: [TM, C] f32 (logical, un-padded class axis).
    sd = sd_ref[0]

    # f_encoder.apply_wnoise(X, sd): X + sd * N(0, 1).  Noise is elementwise,
    # so adding it in the [F, TM] layout (before the folded transpose) is
    # identical to the PyTorch order.  Add in f32 (v5e-safe), operands bf16.
    xn = x_ref[...].astype(jnp.float32) + sd * n_ref[...].astype(jnp.float32)

    # tail: nn.Linear(feature_len, n_class).  torch.transpose(X, 0, 1) is
    # folded into the contraction (lhs contracting dim 0), so
    # logits[n, c] = sum_f xn[f, n] * Wt[f, c].  bf16 operands, f32 acc (MXU).
    logits = jax.lax.dot_general(
        xn.astype(jnp.bfloat16), w_ref[...],
        dimension_numbers=(((0,), (0,)), ((), ())),
        preferred_element_type=jnp.float32)           # [TM, C_pad]
    logits = logits + b_ref[...]

    # Drop the lane padding (static slice inside the first (8,128) lane tile),
    # then a numerically stable LogSoftmax(dim=1) over the real classes only.
    C = o_ref.shape[-1]
    lg = logits[:, :C]                                # [TM, C] f32
    m = jnp.max(lg, axis=-1, keepdims=True)
    s = lg - m
    lse = jnp.log(jnp.sum(jnp.exp(s), axis=-1, keepdims=True))
    o_ref[...] = (s - lse).astype(o_ref.dtype)


@functools.partial(jax.jit, static_argnames=("tile_n",))
def one_hot_net_forward(X, sd, key, W, b, *, tile_n=8192):
    """Forward pass of One_hot_net.

    X: [feature_len, N] (PyTorch layout), sd: noise std, key: jax PRNG key for
    the white noise, W: [n_class, feature_len], b: [n_class].
    Returns log-probabilities of shape [N, n_class] (matches the PyTorch module).

    tile_n: batch rows per grid step.  Large tiles amortize the ~0.35 us
    per-grid-step overhead (VMEM footprint at 8192 is only ~3 MiB); use a
    smaller tile only if you need >= 2 grid steps for v7x's two TensorCores
    at moderate N.
    """
    F_dim, N = X.shape
    C = W.shape[0]
    C_pad = max(128, ((C + 127) // 128) * 128)        # lane-dense matmul width

    # Weight/bias padding happens inside this jit, so it fuses with the call
    # and is not a repeated host-side pass.  W^T is [F, C_pad] bf16,
    # VMEM-resident across all batch tiles (F*C_pad*2 bytes).
    Wt = jnp.zeros((F_dim, C_pad), jnp.bfloat16).at[:, :C].set(
        W.T.astype(jnp.bfloat16))
    b_pad = jnp.zeros((1, C_pad), jnp.float32).at[0, :C].set(
        b.astype(jnp.float32))

    # White noise stream, bf16, same layout as X.
    # TODO(synk): replace with in-kernel pltpu.stateful_normal on TPU-only
    # builds to eliminate this HBM stream (no CPU/interpret lowering exists).
    noise = jax.random.normal(key, (F_dim, N), dtype=jnp.bfloat16)
    Xb = X.astype(jnp.bfloat16)                       # halves the X read stream

    TM = N if N <= tile_n else tile_n
    grid = (pl.cdiv(N, TM),)
    sd_arr = jnp.full((1,), sd, dtype=jnp.float32)

    cost = pl.CostEstimate(
        flops=2 * N * F_dim * C_pad,
        transcendentals=2 * N * C,                    # exp + log in the softmax
        bytes_accessed=(N * F_dim * 2) * 2            # X + noise, bf16
                       + F_dim * C_pad * 2            # W^T, bf16
                       + C_pad * 4                    # bias
                       + N * C * 4)                   # output, f32

    out = pl.pallas_call(
        one_hot_net_kernel,
        out_shape=jax.ShapeDtypeStruct((N, C), jnp.float32),
        grid=grid,
        in_specs=[
            pl.BlockSpec(memory_space=pltpu.SMEM),            # sd scalar
            pl.BlockSpec((F_dim, TM), lambda i: (0, i)),      # X tile (native [F, N])
            pl.BlockSpec((F_dim, TM), lambda i: (0, i)),      # noise tile
            pl.BlockSpec((F_dim, C_pad), lambda i: (0, 0)),   # W^T (VMEM-resident)
            pl.BlockSpec((1, C_pad), lambda i: (0, 0)),       # bias
        ],
        # Block spans the full class dim, so the HBM side of the output DMA is
        # contiguous and only the logical N*C*4 bytes are written (no padded
        # slab, no wrapper slice pass).
        out_specs=pl.BlockSpec((TM, C), lambda i: (i, 0)),
        compiler_params=pltpu.CompilerParams(
            dimension_semantics=("parallel",),
            vmem_limit_bytes=64 * 1024 * 1024),
        cost_estimate=cost,
    )(sd_arr, Xb, noise, Wt, b_pad)
    return out


if __name__ == "__main__":
    # Module hyper-parameters (small, consistent with the __init__ signature).
    in_dim = 8
    encoder_multiplier = 4
    feature_len = in_dim * encoder_multiplier  # 32
    n_class = 16
    batch = 8
    epsilon = 1e-6  # unused in forward (kept for parity with __init__)

    key = jax.random.PRNGKey(0)
    k_x, k_w, k_b, k_n0, k_n1 = jax.random.split(key, 5)

    # Input X in the PyTorch layout [feature_len, batch] (it gets transposed
    # inside forward before the Linear layer).
    X = jax.random.normal(k_x, (feature_len, batch), dtype=jnp.float32)

    # Deterministic nn.Linear(feature_len, n_class) parameters.
    bound = 1.0 / (feature_len ** 0.5)
    W = jax.random.uniform(k_w, (n_class, feature_len), jnp.float32, -bound, bound)
    b = jax.random.uniform(k_b, (n_class,), jnp.float32, -bound, bound)

    # Pure-JAX reference at bf16 operand precision (the kernel's matmul is bf16).
    def ref_forward(X, sd, key):
        noise = jax.random.normal(key, X.shape, dtype=jnp.bfloat16).astype(jnp.float32)
        xn = X.astype(jnp.bfloat16).astype(jnp.float32) + sd * noise
        xn = xn.astype(jnp.bfloat16).astype(jnp.float32)
        wb = W.astype(jnp.bfloat16).astype(jnp.float32)
        return jax.nn.log_softmax(xn.T @ wb.T + b, axis=1)

    # (1) sd = 0: noise term vanishes -> checks matmul / folded transpose /
    #     log-softmax semantics.
    out0 = jax.block_until_ready(one_hot_net_forward(X, 0.0, k_n0, W, b))
    ref0 = ref_forward(X, 0.0, k_n0)
    assert out0.shape == (batch, n_class)
    assert jnp.allclose(out0, ref0, atol=2e-2, rtol=2e-2), \
        float(jnp.max(jnp.abs(out0 - ref0)))

    # (2) sd > 0: exercises the noise path with the same deterministic noise
    #     stream as the reference; also check rows are valid log-probabilities.
    out1 = jax.block_until_ready(one_hot_net_forward(X, 0.1, k_n1, W, b))
    ref1 = ref_forward(X, 0.1, k_n1)
    assert out1.shape == (batch, n_class)
    assert bool(jnp.all(jnp.isfinite(out1)))
    assert jnp.allclose(out1, ref1, atol=3e-2, rtol=3e-2), \
        float(jnp.max(jnp.abs(out1 - ref1)))
    row_sums = jnp.sum(jnp.exp(out1), axis=1)
    assert jnp.allclose(row_sums, 1.0, atol=1e-3)

    print("KERNEL_OK")
</pallas_src>

<mosaic_0001>
module attributes {stable_mosaic.version = 11 : i64} {
  func.func @one_hot_net_kernel(%arg0: i32, %arg1: memref<1xf32, #tpu.memory_space<smem>>, %arg2: memref<32x8xbf16, #tpu.memory_space<vmem>>, %arg3: memref<32x8xbf16, #tpu.memory_space<vmem>>, %arg4: memref<32x128xbf16, #tpu.memory_space<vmem>>, %arg5: memref<1x128xf32, #tpu.memory_space<vmem>>, %arg6: memref<8x16xf32, #tpu.memory_space<vmem>>) attributes {dimension_semantics = [#tpu.dimension_semantics<parallel>], iteration_bounds = array<i64: 1>, scalar_prefetch = 0 : i64, scratch_operands = 0 : i64, tpu.core_type = #tpu.core_type<tc>, window_params = [{transform_indices = @transform_0, window_bounds = array<i64: 1>}, {transform_indices = @transform_1, window_bounds = array<i64: 32, 8>}, {transform_indices = @transform_2, window_bounds = array<i64: 32, 8>}, {pipeline_mode = #tpu.pipeline_mode<synchronous>, transform_indices = @transform_3, window_bounds = array<i64: 32, 128>}, {pipeline_mode = #tpu.pipeline_mode<synchronous>, transform_indices = @transform_4, window_bounds = array<i64: 1, 128>}, {transform_indices = @transform_5, window_bounds = array<i64: 8, 16>}]} {
    %c0 = arith.constant 0 : index
    %0 = memref.load %arg1[%c0] : memref<1xf32, #tpu.memory_space<smem>>
    %c0_0 = arith.constant 0 : index
    %c0_1 = arith.constant 0 : index
    %1 = vector.load %arg2[%c0_0, %c0_1] : memref<32x8xbf16, #tpu.memory_space<vmem>>, vector<32x8xbf16>
    %2 = arith.extf %1 : vector<32x8xbf16> to vector<32x8xf32>
    %c0_2 = arith.constant 0 : index
    %c0_3 = arith.constant 0 : index
    %3 = vector.load %arg3[%c0_2, %c0_3] : memref<32x8xbf16, #tpu.memory_space<vmem>>, vector<32x8xbf16>
    %4 = arith.extf %3 : vector<32x8xbf16> to vector<32x8xf32>
    %5 = vector.broadcast %0 : f32 to vector<32x8xf32>
    %6 = arith.mulf %5, %4 : vector<32x8xf32>
    %7 = arith.addf %2, %6 : vector<32x8xf32>
    %8 = arith.truncf %7 : vector<32x8xf32> to vector<32x8xbf16>
    %c0_4 = arith.constant 0 : index
    %c0_5 = arith.constant 0 : index
    %9 = vector.load %arg4[%c0_4, %c0_5] : memref<32x128xbf16, #tpu.memory_space<vmem>>, vector<32x128xbf16>
    %cst = arith.constant dense<0.000000e+00> : vector<8x128xf32>
    %10 = tpu.matmul %8, %9, %cst {dimension_numbers = #tpu.dot_dimension_numbers<[0], [0], [1], [1], [0, 1, 1, 1], [], []>} : vector<32x8xbf16>, vector<32x128xbf16>, vector<8x128xf32> -> vector<8x128xf32>
    %c0_6 = arith.constant 0 : index
    %c0_7 = arith.constant 0 : index
    %11 = vector.load %arg5[%c0_6, %c0_7] : memref<1x128xf32, #tpu.memory_space<vmem>>, vector<1x128xf32>
    %12 = vector.broadcast %11 : vector<1x128xf32> to vector<8x128xf32>
    %13 = arith.addf %10, %12 : vector<8x128xf32>
    %14 = vector.extract_strided_slice %13 {offsets = [0, 0], sizes = [8, 16], strides = [1, 1]} : vector<8x128xf32> to vector<8x16xf32>
    %cst_8 = arith.constant dense<0xFF800000> : vector<8xf32>
    %15 = vector.multi_reduction <maximumf>, %14, %cst_8 [1] : vector<8x16xf32> to vector<8xf32>
    %16 = vector.shape_cast %15 : vector<8xf32> to vector<8x1xf32>
    %17 = vector.broadcast %16 : vector<8x1xf32> to vector<8x16xf32>
    %18 = arith.subf %14, %17 : vector<8x16xf32>
    %19 = math.exp %18 : vector<8x16xf32>
    %cst_9 = arith.constant dense<0.000000e+00> : vector<8xf32>
    %20 = vector.multi_reduction <add>, %19, %cst_9 [1] : vector<8x16xf32> to vector<8xf32>
    %21 = vector.shape_cast %20 : vector<8xf32> to vector<8x1xf32>
    %22 = math.log %21 : vector<8x1xf32>
    %23 = vector.broadcast %22 : vector<8x1xf32> to vector<8x16xf32>
    %24 = arith.subf %18, %23 : vector<8x16xf32>
    %c0_10 = arith.constant 0 : index
    %c0_11 = arith.constant 0 : index
    %25 = vector.load %arg6[%c0_10, %c0_11] : memref<8x16xf32, #tpu.memory_space<vmem>>, vector<8x16xf32>
    tpu.vector_store %arg6[%c0_10, %c0_11], %24 {strides = array<i32>} : memref<8x16xf32, #tpu.memory_space<vmem>>, vector<8x16xf32>,
    return
  }
  func.func @transform_0(%arg0: i32) -> i32 {
    %c0_i32 = arith.constant 0 : i32
    %c0_i32_0 = arith.constant 0 : i32
    return %c0_i32 : i32
  }
  func.func @transform_1(%arg0: i32) -> (i32, i32) {
    %c0_i32 = arith.constant 0 : i32
    %c0_i32_0 = arith.constant 0 : i32
    return %c0_i32, %arg0 : i32, i32
  }
  func.func @transform_2(%arg0: i32) -> (i32, i32) {
    %c0_i32 = arith.constant 0 : i32
    %c0_i32_0 = arith.constant 0 : i32
    return %c0_i32, %arg0 : i32, i32
  }
  func.func @transform_3(%arg0: i32) -> (i32, i32) {
    %c0_i32 = arith.constant 0 : i32
    %c0_i32_0 = arith.constant 0 : i32
    %c0_i32_1 = arith.constant 0 : i32
    return %c0_i32, %c0_i32_0 : i32, i32
  }
  func.func @transform_4(%arg0: i32) -> (i32, i32) {
    %c0_i32 = arith.constant 0 : i32
    %c0_i32_0 = arith.constant 0 : i32
    %c0_i32_1 = arith.constant 0 : i32
    return %c0_i32, %c0_i32_0 : i32, i32
  }
  func.func @transform_5(%arg0: i32) -> (i32, i32) {
    %c0_i32 = arith.constant 0 : i32
    %c0_i32_0 = arith.constant 0 : i32
    return %arg0, %c0_i32 : i32, i32
  }
}

</mosaic_0001>

<bundles_post_ra>
// kernel: one_hot_net_forward.1
= control target key start
LH: loop header
LB: loop body
LE: loop exit
PB: predicated region body
PF: predicated region fallthrough
CT: control target
= control target key end

     0   :  { %11 = vsyncpa [#allocation4], 0  ;;  %s506_s0 = inlined_call_operand.<no memory space> [shape: f32[1], index: 0, kind: input, shape index: {}]   ;;  %s507_s1 = inlined_call_operand.hbm [shape: bf16[32,8], index: 1, kind: input, shape index: {}]   ;;  %s508_s2 = inlined_call_operand.hbm [shape: bf16[32,8], index: 2, kind: input, shape index: {}]   ;;  %s509_s3 = inlined_call_operand.hbm [shape: bf16[32,128], index: 3, kind: input, shape index: {}]   ;;  %s510_s4 = inlined_call_operand.hbm [shape: f32[1,128], index: 4, kind: input, shape index: {}]   ;;  %s511_s5 = inlined_call_operand.hbm [shape: f32[8,16], index: 5, kind: output, shape index: {}]  }
   0x1   :  { %12 = vsyncpa [#allocation7], 0 }
   0x2   :  { %13 = vsyncpa [#allocation10], 0 }
   0x3   :  { %14 = vsyncpa [#allocation5], 0  ;;  %s385_s18 = smov [#allocation6]   ;;  %s386_s20 = smov [#allocation3]  }
   0x4   :  { %s34_s19 = sshll.u32 %s385_s18, 4  ;;  %s22_s21 = sshll.u32 %s386_s20, 4  ;;  %s35_s19 = int_to_ptr.vmem [resolvable:$true] %s34_s19  ;;  %s424_s21 = int_to_ptr.vmem [resolvable:$true] %s22_s21 }
   0x5   :  { %s267_s24 = scalar_lea.hbm %s508_s2, 256 }
   0x6   :  { %p268_p0 = scmp.ne.s32.totalorder %s508_s2, %s267_s24  ;;  %p271_p1 = scmp.lt.u32.totalorder %s267_s24, %s508_s2 }
   0x8   :  { %p273_p2 = pnand %p271_p1, %p268_p0 }
   0xa   :  { %276 = shalt.err (!%p273_p2)
}
   0xb   :  { %s277_s29 = scalar_lea.vmem %s35_s19, 256  ;;  %p282_p4 = scmp.lt.s32.totalorder %s35_s19, %s35_s19 }
   0xc   :  { %p278_p3 = scmp.ne.s32.totalorder %s35_s19, %s277_s29  ;;  %p283_p5 = scmp.lt.s32.totalorder %s277_s29, %s277_s29 }
   0xe   :  { %p284_p6 = por %p283_p5, %p282_p4 }
  0x10   :  { %p285_p7 = pnand %p284_p6, %p278_p3 }
  0x12   :  { %288 = shalt.err (!%p285_p7)
}
  0x13   :  { %s387_s30 = smov 64   ;;  %s388_s6 = smov 4  }
  0x14   :  { %40 = dma.hbm_to_vmem [thread:$0]  %s508_s2, 256, %s35_s19, [#allocation7], %s387_s30, %s387_s30, %s388_s6  }
  0x15   :  { %s289_s11 = scalar_lea.hbm %s507_s1, 256 }
  0x16   :  { %p290_p8 = scmp.ne.s32.totalorder %s507_s1, %s289_s11  ;;  %p293_p9 = scmp.lt.u32.totalorder %s289_s11, %s507_s1 }
  0x18   :  { %p295_p10 = pnand %p293_p9, %p290_p8 }
  0x1a   :  { %298 = shalt.err (!%p295_p10)
}
  0x1b   :  { %s299_s16 = scalar_lea.vmem %s424_s21, 256  ;;  %p304_p12 = scmp.lt.s32.totalorder %s424_s21, %s424_s21 }
  0x1c   :  { %p300_p11 = scmp.ne.s32.totalorder %s424_s21, %s299_s16  ;;  %p305_p13 = scmp.lt.s32.totalorder %s299_s16, %s299_s16 }
  0x1e   :  { %p306_p0 = por %p305_p13, %p304_p12 }
  0x20   :  { %p307_p1 = pnand %p306_p0, %p300_p11 }
  0x22   :  { %310 = shalt.err (!%p307_p1)
}
  0x23   :  { %28 = dma.hbm_to_vmem [thread:$0]  %s507_s1, 256, %s424_s21, [#allocation4], %s387_s30, %s387_s30, %s388_s6  }
  0x24   :  { %s389_s18 = smov [#allocation8]   ;;  %s390_s20 = smov [#allocation9]  }
  0x25   :  { %s46_s19 = sshll.u32 %s389_s18, 4  ;;  %s59_s22 = sshll.u32 %s390_s20, 4  ;;  %s47_s19 = int_to_ptr.vmem [resolvable:$true] %s46_s19  ;;  %s60_s22 = int_to_ptr.vmem [resolvable:$true] %s59_s22 }
  0x26   :  { %s311_s25 = scalar_lea.hbm %s509_s3, 256 }
  0x27   :  { %p312_p2 = scmp.ne.s32.totalorder %s509_s3, %s311_s25  ;;  %p315_p3 = scmp.lt.u32.totalorder %s311_s25, %s509_s3 }
  0x29   :  { %p317_p4 = pnand %p315_p3, %p312_p2 }
  0x2b   :  { %320 = shalt.err (!%p317_p4)
}
  0x2c   :  { %s321_s1 = scalar_lea.vmem %s47_s19, 256  ;;  %p326_p6 = scmp.lt.s32.totalorder %s47_s19, %s47_s19 }
  0x2d   :  { %p322_p5 = scmp.ne.s32.totalorder %s47_s19, %s321_s1  ;;  %p327_p7 = scmp.lt.s32.totalorder %s321_s1, %s321_s1 }
  0x2f   :  { %p328_p8 = por %p327_p7, %p326_p6 }
  0x31   :  { %p329_p9 = pnand %p328_p8, %p322_p5 }
  0x33   :  { %332 = shalt.err (!%p329_p9)
}
  0x34   :  { %52 = dma.hbm_to_vmem [thread:$0]  %s509_s3, 256, %s47_s19, [#allocation7], %s387_s30, %s387_s30, %s388_s6  }
  0x35   :  { %s333_s10 = scalar_lea.hbm %s510_s4, 16 }
  0x36   :  { %p334_p10 = scmp.ne.s32.totalorder %s510_s4, %s333_s10  ;;  %p337_p11 = scmp.lt.u32.totalorder %s333_s10, %s510_s4 }
  0x38   :  { %p339_p12 = pnand %p337_p11, %p334_p10 }
  0x3a   :  { %342 = shalt.err (!%p339_p12)
}
  0x3b   :  { %s343_s15 = scalar_lea.vmem %s60_s22, 16  ;;  %s347_s16 = scalar_lea.vmem %s60_s22, 32 }
  0x3c   :  { %p344_p13 = scmp.ne.s32.totalorder %s60_s22, %s343_s15  ;;  %p348_p0 = scmp.lt.s32.totalorder %s60_s22, %s60_s22 }
  0x3d   :  { %p349_p1 = scmp.lt.s32.totalorder %s347_s16, %s343_s15 }
  0x3f   :  { %p350_p2 = por %p349_p1, %p348_p0 }
  0x41   :  { %p351_p3 = pnand %p350_p2, %p344_p13 }
  0x43   :  { %354 = shalt.err (!%p351_p3)
}
  0x44   :  { %62 = dma.hbm_to_vmem [thread:$0]  %s510_s4, 16, %s60_s22, [#allocation10]  }
  0x45   :  { %377 = dma.done.wait [#allocation4], 256  }
  0x46   :  { %378 = vsyncadd [#allocation4], 4294967040 }
  0x47   :  { %379 = dma.done.wait [#allocation7], 512  }
  0x48   :  { %380 = vsyncadd [#allocation7], 4294966784 }
  0x49   :  { %381 = dma.done.wait [#allocation10], 16  }
  0x4a   :  { %382 = vsyncadd [#allocation10], 4294967280  ;;  %v391_v0 = vmov 0.0   ;;  %vm392_vm0 = vmmov 0   ;;  %v223_v1 = vld [vmem:[#allocation3] sm:$0xff]   ;;  %v231_v2 = vld [vmem:[#allocation6] sm:$0xff]   ;;  %v93_v3 = vstv %s506_s0 }
  0x4b   :  { %243 = vmatprep.subr.bf16.mxu0 %v391_v0  ;;  %247 = vmatprep.mubr.msk.bf16.mxu0 %vm392_vm0, %v391_v0  ;;  %v238_v4 = vld [vmem:[#allocation3 + $0x8] sm:$0xff]   ;;  %v224_v5 = vunpack.c.l.bf16 %v223_v1  ;;  %v225_v6 = vunpack.c.h.bf16 %v223_v1  ;;  %v232_v7 = vunpack.c.l.bf16 %v231_v2  ;;  %v233_v8 = vunpack.c.h.bf16 %v231_v2  ;;  %v239_v9 = vld [vmem:[#allocation6 + $0x8] sm:$0xff]   ;;  %v261_v14 = vld [vmem:[#allocation8] sm:$0xff]   ;;  %s393_s0 = smov [#allocation11]  }
  0x4c   :  { %v228_v10 = vunpack.c.l.bf16 %v238_v4  ;;  %v229_v11 = vunpack.c.h.bf16 %v238_v4  ;;  %v236_v12 = vunpack.c.l.bf16 %v239_v9  ;;  %v237_v13 = vunpack.c.h.bf16 %v239_v9  ;;  %244 = vmatpush3.bf16.msra.mxu0 %v261_v14  ;;  %v262_v19 = vld [vmem:[#allocation8 + $0x8] sm:$0xff]   ;;  %v218_v27 = vld [vmem:[#allocation9] ss:$0 sm:$0xff]  ;;  %s207_s4 = sshll.u32 %s393_s0, 4  ;;  %s208_s4 = int_to_ptr.vmem [resolvable:$true] %s207_s4 }
  0x4d   :  { %v94_v15 = vmul.f32 %v232_v7, %v93_v3  ;;  %v95_v16 = vmul.f32 %v233_v8, %v93_v3  ;;  %245 = vmatprep.subr.bf16.mxu0 %v391_v0  ;;  %vm143_vm1 = vcmask 261120   ;;  %vm187_vm2 = vcmask 130048   ;;  %s355_s17 = scalar_lea.vmem %s208_s4, 128  ;;  %p360_p5 = scmp.lt.s32.totalorder %s208_s4, %s208_s4 }
  0x4e   :  { %v96_v17 = vmul.f32 %v236_v12, %v93_v3  ;;  %v97_v18 = vmul.f32 %v237_v13, %v93_v3  ;;  %p356_p4 = scmp.ne.s32.totalorder %s208_s4, %s355_s17  ;;  %p361_p6 = scmp.lt.s32.totalorder %s355_s17, %s355_s17 }
  0x4f   :  { %v98_v20 = vadd.f32 %v224_v5, %v94_v15  ;;  %v99_v21 = vadd.f32 %v225_v6, %v95_v16 }
  0x50   :  { %v100_v22 = vadd.f32 %v228_v10, %v96_v17  ;;  %v101_v23 = vadd.f32 %v229_v11, %v97_v18  ;;  %246 = vmatpush3.bf16.msra.mxu0 %v262_v19  ;;  %p362_p7 = por %p361_p6, %p360_p5 }
  0x51   :  { %v102_v24 = vpack.c.bf16 %v99_v21, %v98_v20 }
  0x52   :  { %v103_v25 = vpack.c.bf16 %v101_v23, %v100_v22  ;;  %p363_p8 = pnand %p362_p7, %p356_p4 }
  0x53   :  { %115 = vxpose.xlu0.c.b16.start [1/2] (short) (narrow) %v102_v24, 16 }
  0x57   :  { %116 = vxpose.xlu0.c.b16.end [2/2] (short) (narrow) %v103_v25, 16 }
  0xb9   :  { %v123_v26 = vpop.trf.xlu0 }
  0xba   :  { %248 = vmatmul.mubr.msk.bf16.vlgmr.msra.gmra.mrb[0].mxu0 %vm143_vm1, %v123_v26 }
 0x18d   :  { %v181_v28 = vpop.f32.mrb[0].mxu0 }
 0x18e   :  { %v182_v29 = vadd.f32 %v218_v27, %v181_v28  ;;  %v249_v30 = vpop.f32.mrb[1].mxu0 }
 0x18f   :  { %v184_v31 = vpop.f32.mrb[2].mxu0 }
 0x190   :  { %v250_v32 = vpop.f32.mrb[3].mxu0  ;;  %v188_v33 = vsel %vm187_vm2, %v182_v29, -inf }
 0x191   :  { %189 = vmax.xlane.f32.xlu1 %v188_v33 }
 0x21e   :  { %v190_v34 = vpop.xlane.xlu1 %189 }
 0x21f   :  { %v191_v35 = vsub.f32 %v182_v29, %v190_v34 }
 0x221   :  { %v192_v36 = vmul.f32 1.442695, %v191_v35 }
 0x223   :  { %263 = vpow2.f32 %v192_v36 }
 0x22d   :  { %v264_v37 = vpop.eup %263 }
 0x22e   :  { %v194_v38 = vsel %vm187_vm2, %v264_v37, 0.0 }
 0x22f   :  { %195 = vadd.xlane.f32.xlu1 %v194_v38 }
 0x2bc   :  { %v196_v39 = vpop.xlane.xlu1 %195 }
 0x2bd   :  { %265 = vlog2.f32 %v196_v39 }
 0x2c7   :  { %v266_v40 = vpop.eup %265 }
 0x2c8   :  { %v198_v41 = vmul.f32 0.6931472, %v266_v40 }
 0x2ca   :  { %v199_v42 = vsub.f32 %v191_v35, %v198_v41 }
 0x2cc   :  { %200 = vst.msk [vmem:[#allocation11] sm:$0xff] %vm187_vm2, %v199_v42 }
 0x2cd   :  { %366 = shalt.err (!%p363_p8)
}
 0x2ce   :  { %s367_s20 = scalar_lea.hbm %s511_s5, 128 }
 0x2cf   :  { %p368_p9 = scmp.ne.s32.totalorder %s511_s5, %s367_s20  ;;  %p371_p10 = scmp.lt.u32.totalorder %s367_s20, %s511_s5 }
 0x2d1   :  { %p373_p11 = pnand %p371_p10, %p368_p9 }
 0x2d3   :  { %376 = shalt.err (!%p373_p11)
}
 0x2d4   :  { %210 = dma.vmem_to_hbm [thread:$0]  %s208_s4, 128, %s511_s5, [#allocation5]  }
 0x2d5   :  { %383 = dma.done.wait [#allocation5], 128  }
 0x2d6   :  { %384 = vsyncadd [#allocation5], 4294967168 }
 0x2d7   :  { %214 = vsyncpa [#allocation4], 1 }
 0x2d8   :  { %215 = vsyncpa [#allocation7], 1 }
 0x2d9   :  { %216 = vsyncpa [#allocation10], 1 }
 0x2da   :  { %217 = vsyncpa [#allocation5], 1 }

</bundles_post_ra>
